<compile_context>
chip_gen: v7x
topology: tpu7x:2x2x1
jax: 0.10.0
libtpu: 0.0.40
codegen_flags: <defaults>
</compile_context>

<pallas_src>
import functools

import jax
import jax.numpy as jnp
from jax.experimental import pallas as pl
from jax.experimental.pallas import tpu as pltpu


_PAD_LABEL = -(2 ** 31)   # sentinel label for padded rows/columns
                          # (assumes real labels never equal INT32_MIN)


def _round_up(x, m):
    return ((x + m - 1) // m) * m


def _default_vmem_limit():
    """~3/4 of per-core VMEM: ~96 MiB on v5e/v6e (128 MiB), ~48 MiB on v7x (64 MiB)."""
    try:
        cap = int(pltpu.get_tpu_info().vmem_capacity_bytes)
    except Exception:
        cap = 64 * 1024 * 1024
    return min(cap - cap // 4, 100 * 1024 * 1024)


# --------------------------------------------------------------------------- #
# Kernels
# --------------------------------------------------------------------------- #
def _normalize_kernel(x_ref, o_ref):
    """F.normalize(x, p=2, dim=1) on one (TM, D) row tile (EUP rsqrt, no divide)."""
    x = x_ref[...].astype(jnp.float32)
    ss = jnp.sum(x * x, axis=1, keepdims=True)
    # 1/max(||x||, 1e-12) == rsqrt(max(ss, 1e-24))
    o_ref[...] = (x * jax.lax.rsqrt(jnp.maximum(ss, 1e-24))).astype(o_ref.dtype)


def _hard_mine_kernel(xi_ref, xj_ref, li_ref, lj_ref, pos_ref, neg_ref, *,
                      tile_m, tile_n, chunk):
    """One (TM, TN) Gram tile; running per-row MAX of masked Gram values.

    Since rows are unit-norm, d = sqrt(2 - 2<a,b>) is monotone decreasing in
    the Gram value, so max-Gram mining selects exactly the same hardest
    positives/negatives as min-distance mining; the sqrt/affine/clamp is
    hoisted to the O(N) epilogue in the wrapper.
    """
    i = pl.program_id(0)
    j = pl.program_id(1)

    @pl.when(j == 0)
    def _init():
        pos_ref[...] = jnp.full(pos_ref.shape, -jnp.inf, dtype=pos_ref.dtype)
        neg_ref[...] = jnp.full(neg_ref.shape, -jnp.inf, dtype=neg_ref.dtype)

    # Gram block on the MXU; the second operand's contraction dim is consumed
    # in place (dim 1 with dim 1) -> no explicit x.T copy in the wrapper.
    # TODO(synk): confirm via pl.lower_as_mlir that Mosaic does not emit an XLU
    # transpose of the (TN, D) tile; if it does, pre-transpose xn once instead.
    gram = jax.lax.dot_general(
        xi_ref[...], xj_ref[...],
        dimension_numbers=(((1,), (1,)), ((), ())),
        preferred_element_type=jnp.float32,
    )                                                         # (TM, TN) f32

    # Global row/column ids of this tile (columns stay inside this row's chunk).
    row_ids = i * tile_m + jax.lax.broadcasted_iota(jnp.int32, (tile_m, 1), 0)
    col_start = ((i * tile_m) // chunk) * chunk + j * tile_n
    col_ids = col_start + jax.lax.broadcasted_iota(jnp.int32, (1, tile_n), 1)

    lj = lj_ref[...]                                # (1, TN) lane-oriented labels
    same = li_ref[...] == lj                        # (TM,1)==(1,TN) -> (TM,TN)
    col_ok = lj != _PAD_LABEL                       # padded cols carry sentinel
    not_diag = row_ids != col_ids

    # Positives: padded columns can never match a real label, so no col_ok.
    pos_g = jnp.where(same & not_diag, gram, -jnp.inf)
    neg_g = jnp.where(jnp.logical_not(same) & col_ok, gram, -jnp.inf)

    # One lane-axis reduce per tile, then running element-wise max (VPU) across
    # the "arbitrary" column axis, accumulated in the resident output blocks.
    # TODO(synk): lane-dense (1, TM) accumulators would avoid masked vst.msk
    # stores but add an XLU transpose per tile; kept sublane-oriented.
    pos_ref[...] = jnp.maximum(pos_ref[...], jnp.max(pos_g, axis=1, keepdims=True))
    neg_ref[...] = jnp.maximum(neg_ref[...], jnp.max(neg_g, axis=1, keepdims=True))


# --------------------------------------------------------------------------- #
# Wrapper
# --------------------------------------------------------------------------- #
def triplet_loss(features, labels, margin=0.3, batch_size=1024, *,
                 block_rows=256, block_cols=512, gram_dtype=jnp.bfloat16):
    """Mirrors TripletLoss.forward (mining='batch_hard').

    Note: bf16 Gram operands (default) quantize the normalized rows, so the
    hardest-sample selection can flip on near-ties vs an f32 reference; pass
    gram_dtype=jnp.float32 for tight-tolerance results.
    """
    n, d = features.shape
    if n <= 1:
        return jnp.float32(0.0)

    feats = features.astype(jnp.float32)
    labs = labels.astype(jnp.int32)

    # ---- tile / chunk geometry (all static Python ints) ---------------------
    if n <= batch_size:
        if n <= block_cols:
            n_pad = _round_up(n, 16)
            tn = n_pad                       # single column tile
            tm = n_pad // 2                  # >=2 row tiles for v7x's 2 TCs
        else:
            assert block_cols % 128 == 0 and block_rows % 8 == 0
            assert block_cols % block_rows == 0
            tm, tn = block_rows, block_cols
            n_pad = _round_up(n, tn)
        chunk = n_pad                        # one chunk spans the whole batch
    else:
        assert block_cols % 128 == 0 and block_rows % 8 == 0
        assert batch_size % block_cols == 0 and batch_size % block_rows == 0
        tm, tn = block_rows, block_cols
        chunk = batch_size                   # mining restricted to each chunk
        n_pad = _round_up(n, chunk)

    # Keep >=2 row tiles when possible (v7x has 2 TensorCores per chip).
    if n_pad // tm < 2 and (tm // 2) % 8 == 0 and tn % (tm // 2) == 0:
        tm //= 2

    if n_pad > n:
        feats = jnp.pad(feats, ((0, n_pad - n), (0, 0)))
        labs = jnp.pad(labs, (0, n_pad - n), constant_values=_PAD_LABEL)

    vmem_limit = _default_vmem_limit()

    # ---- pre-pass: L2 row-normalization (done exactly once), emits gram_dtype
    xn = pl.pallas_call(
        _normalize_kernel,
        out_shape=jax.ShapeDtypeStruct((n_pad, d), gram_dtype),
        grid=(n_pad // tm,),
        in_specs=[pl.BlockSpec((tm, d), lambda i: (i, 0))],
        out_specs=pl.BlockSpec((tm, d), lambda i: (i, 0)),
        compiler_params=pltpu.CompilerParams(
            dimension_semantics=("parallel",),
            vmem_limit_bytes=vmem_limit),
    )(feats)

    li = labs.reshape(n_pad, 1)              # row labels, sublane-oriented
    lj = labs.reshape(1, n_pad)              # col labels, lane-oriented

    col_tiles_per_chunk = chunk // tn

    def col_block(i, j):
        # Column tiles of row-tile i sweep only that row's chunk.
        return ((i * tm) // chunk) * col_tiles_per_chunk + j

    kernel = functools.partial(_hard_mine_kernel, tile_m=tm, tile_n=tn, chunk=chunk)

    hp_g, hn_g = pl.pallas_call(
        kernel,
        out_shape=(jax.ShapeDtypeStruct((n_pad, 1), jnp.float32),
                   jax.ShapeDtypeStruct((n_pad, 1), jnp.float32)),
        grid=(n_pad // tm, col_tiles_per_chunk),
        in_specs=[
            pl.BlockSpec((tm, d), lambda i, j: (i, 0)),                 # resident rows
            pl.BlockSpec((tn, d), lambda i, j: (col_block(i, j), 0)),   # streamed cols
            pl.BlockSpec((tm, 1), lambda i, j: (i, 0)),                 # row labels
            pl.BlockSpec((1, tn), lambda i, j: (0, col_block(i, j))),   # col labels
        ],
        out_specs=(
            pl.BlockSpec((tm, 1), lambda i, j: (i, 0)),                 # hardest-pos gram
            pl.BlockSpec((tm, 1), lambda i, j: (i, 0)),                 # hardest-neg gram
        ),
        compiler_params=pltpu.CompilerParams(
            dimension_semantics=("parallel", "arbitrary"),
            vmem_limit_bytes=vmem_limit),
    )(xn, xn, li, lj)

    # ---- O(N) epilogue: gram -> distance, hinge, masked per-chunk mean -------
    # Rows are unit-norm after the pre-pass, so d^2 = 2 - 2<a,b>.
    # TODO(synk): an all-zero real feature row normalizes to 0 and gets distance
    # sqrt(2) to unit rows; the PyTorch cdist form would give 1.0 for that row.
    hp_g = hp_g[:, 0]
    hn_g = hn_g[:, 0]
    row_ok = jnp.arange(n_pad) < n
    valid = row_ok & (hp_g > -jnp.inf) & (hn_g > -jnp.inf)
    hp = jnp.sqrt(jnp.maximum(2.0 - 2.0 * jnp.where(valid, hp_g, 1.0), 0.0))
    hn = jnp.sqrt(jnp.maximum(2.0 - 2.0 * jnp.where(valid, hn_g, 1.0), 0.0))
    per = jnp.where(valid, jnp.maximum(hp - hn + margin, 0.0), 0.0)

    num_chunks = n_pad // chunk              # == ceil(n / batch_size) when chunked
    per_c = per.reshape(num_chunks, chunk).sum(axis=1)
    cnt_c = valid.reshape(num_chunks, chunk).sum(axis=1).astype(jnp.float32)
    loss_c = jnp.where(cnt_c > 0.0, per_c / jnp.maximum(cnt_c, 1.0), 0.0)
    return jnp.sum(loss_c) / num_chunks


# --------------------------------------------------------------------------- #
# Pure-JAX reference (mirrors the PyTorch forward, incl. chunking)
# --------------------------------------------------------------------------- #
def _reference(features, labels, margin=0.3, batch_size=1024):
    x = features.astype(jnp.float32)
    x = x / jnp.maximum(jnp.linalg.norm(x, axis=1, keepdims=True), 1e-12)
    n = x.shape[0]

    def block(xb, lb):
        sq = jnp.sum(xb * xb, axis=1)
        d2 = sq[:, None] + sq[None, :] - 2.0 * (xb @ xb.T)
        dist = jnp.sqrt(jnp.maximum(d2, 0.0))
        same = lb[:, None] == lb[None, :]
        eye = jnp.eye(xb.shape[0], dtype=bool)
        hp = jnp.min(jnp.where(same & ~eye, dist, jnp.inf), axis=1)
        hn = jnp.min(jnp.where(~same, dist, jnp.inf), axis=1)
        v = (hp < jnp.inf) & (hn < jnp.inf)
        per = jnp.maximum(hp - hn + margin, 0.0)
        c = jnp.sum(v)
        return jnp.where(c > 0, jnp.sum(jnp.where(v, per, 0.0)) / c, 0.0)

    if n <= batch_size:
        return block(x, labels)
    total = 0.0
    for s in range(0, n, batch_size):
        e = min(s + batch_size, n)
        total = total + block(x[s:e], labels[s:e])
    return total / ((n + batch_size - 1) // batch_size)


if __name__ == "__main__":
    key = jax.random.PRNGKey(0)
    k1, k2, k3, k4 = jax.random.split(key, 4)

    # Case 1: small single-chunk path (N=32 -> 2 row tiles of 16), f32 Gram.
    f1 = jax.random.normal(k1, (32, 64), dtype=jnp.float32)
    l1 = jax.random.randint(k2, (32,), 0, 4, dtype=jnp.int32)
    out1 = jax.block_until_ready(
        triplet_loss(f1, l1, margin=0.3, gram_dtype=jnp.float32))
    ref1 = _reference(f1, l1, margin=0.3)
    assert jnp.allclose(out1, ref1, atol=1e-4, rtol=1e-4), (out1, ref1)

    # Case 2: tiled + padded grid (N=150 -> 256, grid (8, 2)), single chunk,
    # running-max accumulation across column tiles.  f32 Gram for tight tol.
    f2 = jax.random.normal(k3, (150, 64), dtype=jnp.float32)
    l2 = jax.random.randint(k4, (150,), 0, 6, dtype=jnp.int32)
    out2 = jax.block_until_ready(
        triplet_loss(f2, l2, margin=0.3, block_rows=32, block_cols=128,
                     gram_dtype=jnp.float32))
    ref2 = _reference(f2, l2, margin=0.3)
    assert jnp.allclose(out2, ref2, atol=1e-4, rtol=1e-4), (out2, ref2)

    # Case 3: >batch_size chunking folded into one pallas_call (2 chunks of 128).
    out3 = jax.block_until_ready(
        triplet_loss(f2, l2, margin=0.3, batch_size=128,
                     block_rows=32, block_cols=128, gram_dtype=jnp.float32))
    ref3 = _reference(f2, l2, margin=0.3, batch_size=128)
    assert jnp.allclose(out3, ref3, atol=1e-4, rtol=1e-4), (out3, ref3)

    # Case 4: default bf16 Gram operands (f32 MXU accumulation) — loose
    # tolerance vs the f32 reference (bf16 quantization of normalized rows).
    out4 = jax.block_until_ready(triplet_loss(f1, l1, margin=0.3))
    assert jnp.allclose(out4, ref1, atol=3e-2, rtol=0.0), (out4, ref1)

    print("KERNEL_OK")
</pallas_src>

<mosaic_0001>
module attributes {stable_mosaic.version = 11 : i64} {
  func.func @_normalize_kernel(%arg0: i32, %arg1: memref<16x64xf32, #tpu.memory_space<vmem>>, %arg2: memref<16x64xf32, #tpu.memory_space<vmem>>) attributes {dimension_semantics = [#tpu.dimension_semantics<parallel>], iteration_bounds = array<i64: 2>, scalar_prefetch = 0 : i64, scratch_operands = 0 : i64, tpu.core_type = #tpu.core_type<tc>, window_params = [{transform_indices = @transform_0, window_bounds = array<i64: 16, 64>}, {transform_indices = @transform_1, window_bounds = array<i64: 16, 64>}]} {
    %c0 = arith.constant 0 : index
    %c0_0 = arith.constant 0 : index
    %0 = vector.load %arg1[%c0, %c0_0] : memref<16x64xf32, #tpu.memory_space<vmem>>, vector<16x64xf32>
    %1 = arith.mulf %0, %0 : vector<16x64xf32>
    %cst = arith.constant dense<0.000000e+00> : vector<16xf32>
    %2 = vector.multi_reduction <add>, %1, %cst [1] : vector<16x64xf32> to vector<16xf32>
    %3 = vector.shape_cast %2 : vector<16xf32> to vector<16x1xf32>
    %cst_1 = arith.constant 1.000000e-24 : f32
    %4 = vector.broadcast %cst_1 : f32 to vector<16x1xf32>
    %5 = arith.maximumf %3, %4 : vector<16x1xf32>
    %6 = math.rsqrt %5 : vector<16x1xf32>
    %7 = vector.broadcast %6 : vector<16x1xf32> to vector<16x64xf32>
    %8 = arith.mulf %0, %7 : vector<16x64xf32>
    %c0_2 = arith.constant 0 : index
    %c0_3 = arith.constant 0 : index
    %9 = vector.load %arg2[%c0_2, %c0_3] : memref<16x64xf32, #tpu.memory_space<vmem>>, vector<16x64xf32>
    tpu.vector_store %arg2[%c0_2, %c0_3], %8 {strides = array<i32>} : memref<16x64xf32, #tpu.memory_space<vmem>>, vector<16x64xf32>,
    return
  }
  func.func @transform_0(%arg0: i32) -> (i32, i32) {
    %c0_i32 = arith.constant 0 : i32
    %c0_i32_0 = arith.constant 0 : i32
    return %arg0, %c0_i32 : i32, i32
  }
  func.func @transform_1(%arg0: i32) -> (i32, i32) {
    %c0_i32 = arith.constant 0 : i32
    %c0_i32_0 = arith.constant 0 : i32
    return %arg0, %c0_i32 : i32, i32
  }
}

</mosaic_0001>

<bundles_post_ra>
// kernel: tpu_custom_call.1
= control target key start
LH: loop header
LB: loop body
LE: loop exit
PB: predicated region body
PF: predicated region fallthrough
CT: control target
= control target key end

     0   :  { %6 = vsyncpa [#allocation3], 0  ;;  %s593_s0 = inlined_call_operand.hbm [shape: f32[32,64], index: 0, kind: input, shape index: {}]   ;;  %s594_s1 = inlined_call_operand.hbm [shape: f32[32,64], index: 1, kind: output, shape index: {}]  }
   0x1   :  { %8 = vsyncpa [#allocation3 + $0x1], 0 }
   0x2   :  { %9 = vsyncpa [#allocation4], 0 }
   0x3   :  { %11 = vsyncpa [#allocation4 + $0x1], 0  ;;  %s427_s6 = smov 0   ;;  %s429_s7 = smov 0  }
   0x4   :  { %s431_s8 = smov 0   ;;  %s433_s9 = smov 0  }
   0x5 LB: > { %s448_s10 = sadd.s32 4294967295, %s409_s9   ;;  %s243_s11 = sadd.s32 4294967294, %s409_s9   ;;  %s409_s9 = sphi %s433_s9, %s607_s9   ;;  %s405_s8 = sphi %s431_s8, %s606_s8   ;;  %s401_s7 = sphi %s429_s7, %s605_s7   ;;  %s397_s6 = sphi %s427_s6, %s604_s6  }
   0x6   : > { %s452_s12 = sadd.s32 1, %s409_s9   ;;  %s24_s13 = sadd.s32 1, %s405_s8 }
   0x7   : > { %s21_s14 = ssub.s32 %s409_s9, %s452_s12  ;;  %p31_p0 = scmp.ne.s32.totalorder %s405_s8, %s401_s7 }
   0x8   : > { %p22_p1 = scmp.eq.s32.totalorder %s21_s14, 0  ;;  %p32_p2 = scmp.eq.s32.totalorder %s409_s9, 0 }
   0x9   : > { %p37_p3 = scmp.ne.s32.totalorder %s401_s7, %s397_s6  ;;  %p38_p4 = scmp.eq.s32.totalorder %s448_s10, 0 }
   0xa   : > { %s464_s15 = scalar_select %p22_p1, %s405_s8, %s24_s13  }
   0xb   : > { %p466_p5 = por %p32_p2, %p31_p0  ;;  %p470_p6 = por %p38_p4, %p37_p3 }
   0xc   : > { %p61_p7 = scmp.eq.s32.totalorder %s448_s10, 1  ;;  %p67_p8 = scmp.eq.s32.totalorder %s243_s11, 1 }
   0xd   : > { %p271_p10 = scmp.lt.s32.totalorder %s409_s9, 2  ;;  %s87_s20 = sand.u32 1, %s405_s8  }
   0xe   : > { %p477_p11 = por %p61_p7, %p31_p0  ;;  %p481_p12 = por %p67_p8, %p37_p3 }
   0xf   : > { %s257_s21 = sshll.u32 %s409_s9, 8  ;;  %s246_s22 = sshll.u32 %s87_s20, 4 }
  0x10   : > { %s598_s18 = scalar_select %p477_p11, 1, 0 }
  0x11   : > { %s599_s19 = scalar_select %p481_p12, 1, 0 }
  0x12   : > { %s490_s25 = scalar_lea.hbm %s593_s0, %s257_s21  ;;  %s91_s26 = scalar_lea.vmem [#allocation2], %s246_s22 }
  0x13   : > { %s98_s27 = sshll.u32 %s91_s26, 4  ;;  %p494_p13 = pnand %p271_p10, %p466_p5  ;;  %s498_s27 = int_to_ptr.vmem [resolvable:$true] %s98_s27 }
  0x14   : > { %s500_s29 = scalar_lea.sflag [#allocation3], %s87_s20  ;;  %s313_s30 = scalar_lea.hbm %s490_s25, 256 }
  0x15   : > { %p314_p0 = scmp.ne.s32.totalorder %s490_s25, %s313_s30  ;;  %p315_p1 = pneg %p494_p13 }
  0x16   : > { %s318_s4 = scalar_lea.hbm %s593_s0, 512  ;;  %p319_p4 = scmp.lt.u32.totalorder %s490_s25, %s593_s0 }
  0x17   : > { %p316_p2 = pnand %p315_p1, %p314_p0  ;;  %p320_p5 = scmp.lt.u32.totalorder %s318_s4, %s313_s30 }
  0x18   : > { %p322_p8 = scmp.lt.u32.totalorder %s313_s30, %s490_s25 }
  0x19   : > { %p317_p3 = pneg %p316_p2  ;;  %p321_p7 = por %p320_p5, %p319_p4 }
  0x1b   : > { %p323_p10 = por %p322_p8, %p321_p7 }
  0x1d   : > { %p324_p9 = pnand %p323_p10, %p317_p3 }
  0x1f   : > { %327 = shalt.err (!%p324_p9)
}
  0x20   : > { %s328_s13 = scalar_lea.vmem %s498_s27, 256  ;;  %s411_s14 = smov [#allocation2]  }
  0x21   : > { %p329_p0 = scmp.ne.s32.totalorder %s498_s27, %s328_s13  ;;  %s333_s16 = sshll.u32 %s411_s14, 4  ;;  %s334_s16 = int_to_ptr.vmem [resolvable:$false] %s333_s16 }
  0x22   : > { %s335_s20 = scalar_lea.vmem %s334_s16, 512  ;;  %p336_p11 = scmp.lt.s32.totalorder %s498_s27, %s334_s16 }
  0x23   : > { %p331_p2 = pnand %p329_p0, %p315_p1  ;;  %p337_p4 = scmp.lt.s32.totalorder %s335_s20, %s328_s13 }
  0x25   : > { %p332_p12 = pneg %p331_p2  ;;  %p338_p5 = por %p337_p4, %p336_p11 }
  0x27   : > { %p339_p7 = pnand %p338_p5, %p332_p12 }
  0x29   : > { %342 = shalt.err (!%p339_p7)
}
  0x2a   : > { %s412_s21 = smov 128   ;;  %s413_s22 = smov 8  }
  0x2b   : > { %266 = dma.hbm_to_vmem [thread:$0]  (!%p494_p13), %s490_s25, 256, %s498_s27, %s500_s29, %s412_s21, %s412_s21, %s413_s22  }
  0x2c   : > { %p249_p9 = scmp.ge.s32.totalorder %s409_s9, 1  ;;  %p106_p1 = scmp.lt.s32.totalorder %s409_s9, 3 }
  0x2e   : > { %p107_p3 = pnand %p249_p9, %p106_p1 }
  0x2f   : > { %s531_s23 = sand.u32 (!%p107_p3), 1, %s401_s7  }
  0x30   : > { %110 = sbr.rel (%p107_p3) target bundleno = 236 (0xec), region = 24  ;;  %s250_s24 = sshll.u32 (!%p107_p3), %s531_s23, 4 }
  0x31   : > { %s113_s26 = scalar_lea.sflag (!%p107_p3), [#allocation3], %s531_s23  ;;  %s116_s30 = scalar_lea.vmem (!%p107_p3), [#allocation2], %s250_s24 }
  0x37   : > { %388 = dma.done.wait (%p470_p6), %s113_s26, 256  }
  0x38   : > { %390 = vsyncadd (%p470_p6), %s113_s26, 4294967040  ;;  %v137_v0 = vld [vmem:[%s116_s30] sm:$0xff]  ;;  %vm141_vm0 = vcmask 523264   ;;  %v138_v1 = vld [vmem:[%s116_s30 + $0x8] sm:$0xff]  ;;  %s258_s17 = sshll.u32 %s448_s10, 8  ;;  %s134_s25 = scalar_lea.vmem [#allocation5], %s250_s24 }
  0x39   : > { %v139_v2 = vmul.f32 %v137_v0, %v137_v0  ;;  %v140_v3 = vmul.f32 %v138_v1, %v138_v1  ;;  %s170_s27 = sshll.u32 %s134_s25, 4  ;;  %s546_s2 = scalar_lea.hbm %s594_s1, %s258_s17  ;;  %s548_s27 = int_to_ptr.vmem [resolvable:$true] %s170_s27 }
  0x3a   : > { %s157_s3 = scalar_lea.sflag [#allocation4], %s531_s23  ;;  %s343_s10 = scalar_lea.vmem %s548_s27, 256 }
  0x3b   : > { %v142_v4 = vsel %vm141_vm0, %v139_v2, 0.0  ;;  %v145_v5 = vsel %vm141_vm0, %v140_v3, 0.0  ;;  %p344_p6 = scmp.ne.s32.totalorder %s548_s27, %s343_s10  ;;  %p601_p11 = scmp.ne.s32.totalorder %s598_s18, 0 }
  0x3c   : > { %143 = vadd.xlane.f32.xlu0 %v142_v4  ;;  %s414_s4 = smov [#allocation5]  }
  0x3d   : > { %p345_p12 = pnand %p344_p6, %p601_p11  ;;  %s347_s5 = sshll.u32 %s414_s4, 4  ;;  %s348_s5 = int_to_ptr.vmem [resolvable:$false] %s347_s5 }
  0x3e   : > { %s349_s11 = scalar_lea.vmem %s348_s5, 512  ;;  %p350_p8 = scmp.lt.s32.totalorder %s548_s27, %s348_s5 }
  0x3f   : > { %p346_p13 = pneg %p345_p12  ;;  %p351_p10 = scmp.lt.s32.totalorder %s349_s11, %s343_s10 }
  0x40   : > { %146 = vadd.xlane.f32.xlu0 %v145_v5 }
  0x41   : > { %p352_p0 = por %p351_p10, %p350_p8 }
  0x43   : > { %p353_p2 = pnand %p352_p0, %p346_p13 }
  0xc9   : > { %v144_v6 = vpop.xlane.xlu0 %143 }
  0xca   : > { %v148_v7 = vmax.f32 %v144_v6, 1e-24 }
  0xcc   : > { %309 = vrsqrt.f32 %v148_v7 }
  0xcd   : > { %v147_v8 = vpop.xlane.xlu0 %146 }
  0xce   : > { %v149_v9 = vmax.f32 %v147_v8, 1e-24 }
  0xd0   : > { %311 = vrsqrt.f32 %v149_v9 }
  0xd6   : > { %v310_v10 = vpop.eup %309 }
  0xd7   : > { %v152_v11 = vmul.f32 %v310_v10, %v137_v0 }
  0xd9   : > { %154 = vst.msk [vmem:[%s134_s25] sm:$0xff] %vm141_vm0, %v152_v11 }
  0xda   : > { %v312_v12 = vpop.eup %311 }
  0xdb   : > { %v153_v13 = vmul.f32 %v312_v12, %v138_v1 }
  0xdd   : > { %155 = vst.msk [vmem:[%s134_s25 + $0x8] sm:$0xff] %vm141_vm0, %v153_v13 }
  0xde   : > { %356 = shalt.err (!%p353_p2)
}
  0xdf   : > { %s357_s13 = scalar_lea.hbm %s546_s2, 256  ;;  %s361_s20 = scalar_lea.hbm %s594_s1, 512 }
  0xe0   : > { %p358_p4 = scmp.ne.s32.totalorder %s546_s2, %s357_s13  ;;  %p362_p9 = scmp.lt.u32.totalorder %s546_s2, %s594_s1 }
  0xe1   : > { %p363_p1 = scmp.lt.u32.totalorder %s361_s20, %s357_s13  ;;  %p365_p6 = scmp.lt.u32.totalorder %s357_s13, %s546_s2 }
  0xe2   : > { %p359_p5 = pnand %p358_p4, %p601_p11 }
  0xe3   : > { %p364_p3 = por %p363_p1, %p362_p9 }
  0xe4   : > { %p360_p7 = pneg %p359_p5 }
  0xe5   : > { %p366_p12 = por %p365_p6, %p364_p3 }
  0xe7   : > { %p367_p13 = pnand %p366_p12, %p360_p7 }
  0xe9   : > { %370 = shalt.err (!%p367_p13)
}
  0xea   : > { %s415_s24 = smov 128   ;;  %s416_s26 = smov 8  }
  0xeb   : > { %261 = dma.vmem_to_hbm [thread:$0]  (%p601_p11), %s548_s27, 256, %s546_s2, %s157_s3, %s415_s24, %s415_s24, %s416_s26  }
  0xec PF: > { %s185_s30 = sand.u32 1, %s397_s6   ;;  %p602_p8 = scmp.ne.s32.totalorder %s599_s19, 0 }
  0xed   : > { %p603_p10 = scmp.ge.s32.totalorder %s409_s9, 2  ;;  %s186_s17 = scalar_lea.sflag [#allocation4], %s185_s30 }
  0xef   : > { %p268_p0 = pnand %p603_p10, %p602_p8 }
  0xf1   : > { %392 = dma.done.wait (!%p268_p0), %s186_s17, 256  }
  0xf2   : > { %394 = vsyncadd (!%p268_p0), %s186_s17, 4294967040  ;;  %p14_p2 = scmp.ge.s32.totalorder %s452_s12, 4   ;;  %s604_s6 = smov %s401_s7 }
  0xf3   : > { %s605_s7 = smov %s405_s8  ;;  %s606_s8 = smov %s464_s15 }
  0xf4   : > { %s607_s9 = smov %s452_s12  ;;  %16 = sbr.rel (!%p14_p2) target bundleno = 5 (0x5), region = 69 }
  0xfb   :  { %191 = vsyncpa [#allocation3], 1 }
  0xfc   :  { %193 = vsyncpa [#allocation3 + $0x1], 1 }
  0xfd   :  { %194 = vsyncpa [#allocation4], 1 }
  0xfe   :  { %196 = vsyncpa [#allocation4 + $0x1], 1 }

</bundles_post_ra>
